<compile_context>
chip_gen: v5e
topology: v5e:2x2
jax: 0.10.0
libtpu: 0.0.40
codegen_flags: <defaults>
</compile_context>

<pallas_src>
import functools

import jax
import jax.numpy as jnp
from jax.experimental import pallas as pl
from jax.experimental.pallas import tpu as pltpu

SMOOTH = 1e-6  # DiceLoss default smooth


def _combined_loss_kernel(logits_ref, labels_ref, o_ref,
                          ce_acc, inter_acc, psum_acc, cnt_acc,
                          *, total_pixels, smooth):
    """logits_ref: (C, TP) f32 tile (pixels lane-dense); labels_ref: (1, TP) i32."""
    i = pl.program_id(0)

    @pl.when(i == 0)
    def _init():
        ce_acc[...] = jnp.zeros_like(ce_acc)
        inter_acc[...] = jnp.zeros_like(inter_acc)
        psum_acc[...] = jnp.zeros_like(psum_acc)
        cnt_acc[...] = jnp.zeros_like(cnt_acc)

    x = logits_ref[...]                                  # (C, TP) f32
    lab = labels_ref[...]                                # (1, TP) i32
    C = x.shape[0]

    # One-hot of the labels built on the VPU (no gather / scatter).
    class_ids = jax.lax.broadcasted_iota(jnp.int32, x.shape, 0)   # (C, TP)
    onehot = (class_ids == lab).astype(jnp.float32)               # (C, TP)

    # Numerically stable softmax along the channel (sublane) axis.
    m = jnp.max(x, axis=0, keepdims=True)                # (1, TP)
    e = jnp.exp(x - m)                                   # (C, TP)
    s = jnp.sum(e, axis=0, keepdims=True)                # (1, TP)
    probs = e * pl.reciprocal(s, approx=False)           # (C, TP)

    # Cross-entropy per pixel: logsumexp(x) - x[true]  (picked via one-hot).
    x_true = jnp.sum(onehot * x, axis=0, keepdims=True)  # (1, TP)
    ce_pix = jnp.log(s) + m - x_true                     # (1, TP)

    # Accumulate global statistics (lane reductions -> tiny per-class columns).
    ce_acc[...] += jnp.sum(ce_pix, axis=1, keepdims=True)               # (1, 1)
    inter_acc[...] += jnp.sum(probs * onehot, axis=1, keepdims=True)    # (C, 1)
    psum_acc[...] += jnp.sum(probs, axis=1, keepdims=True)              # (C, 1)
    cnt_acc[...] += jnp.sum(onehot, axis=1, keepdims=True)              # (C, 1)

    @pl.when(i == pl.num_programs(0) - 1)
    def _finalize():
        ce_mean = ce_acc[...] * (1.0 / total_pixels)                    # (1, 1)
        inter = inter_acc[...]                                          # (C, 1)
        card = psum_acc[...] + cnt_acc[...]                             # (C, 1)
        dice = (2.0 * inter + smooth) / (card + smooth)                 # (C, 1)
        dice_mean = jnp.sum(dice, axis=0, keepdims=True) * (1.0 / C)    # (1, 1)
        o_ref[...] = ce_mean + (1.0 - dice_mean)                        # (1, 1)


def _pick_pixel_tile(P):
    # Largest lane-dense tile (multiple of 128) that divides the pixel count.
    for tp in (1024, 512, 256, 128):
        if P % tp == 0:
            return tp
    return P


@jax.jit
def combined_loss(logits, labels):
    """logits: (B, C, H, W) float; labels: (B, H, W) int.  Returns scalar loss."""
    B, C, H, W = logits.shape
    P = B * H * W

    # Lane-dense layout: channels -> sublanes, pixels -> lanes.
    x = jnp.transpose(logits, (1, 0, 2, 3)).reshape(C, P).astype(jnp.float32)
    lab = labels.reshape(1, P).astype(jnp.int32)

    TP = _pick_pixel_tile(P)
    grid = (P // TP,)

    kernel = functools.partial(_combined_loss_kernel,
                               total_pixels=float(P), smooth=float(SMOOTH))

    out = pl.pallas_call(
        kernel,
        out_shape=jax.ShapeDtypeStruct((1, 1), jnp.float32),
        grid=grid,
        in_specs=[
            pl.BlockSpec((C, TP), lambda i: (0, i)),   # logits tile
            pl.BlockSpec((1, TP), lambda i: (0, i)),   # labels tile
        ],
        out_specs=pl.BlockSpec((1, 1), lambda i: (0, 0)),   # resident scalar output
        scratch_shapes=[
            pltpu.VMEM((1, 1), jnp.float32),   # CE sum
            pltpu.VMEM((C, 1), jnp.float32),   # per-class intersection
            pltpu.VMEM((C, 1), jnp.float32),   # per-class prob sum
            pltpu.VMEM((C, 1), jnp.float32),   # per-class one-hot count
        ],
        compiler_params=pltpu.CompilerParams(
            dimension_semantics=("arbitrary",)),   # pixel axis is a reduction
    )(x, lab)
    return out[0, 0]


def reference(logits, labels):
    """Pure-JAX reference matching the PyTorch CombinedLoss forward."""
    B, C, H, W = logits.shape
    logp = jax.nn.log_softmax(logits.astype(jnp.float32), axis=1)
    probs = jnp.exp(logp)
    onehot = jnp.transpose(jax.nn.one_hot(labels, C, dtype=jnp.float32),
                           (0, 3, 1, 2))                      # (B, C, H, W)
    ce = -jnp.sum(onehot * logp) / (B * H * W)
    dims = (0, 2, 3)
    inter = jnp.sum(probs * onehot, axis=dims)
    card = jnp.sum(probs + onehot, axis=dims)
    dice = (2.0 * inter + SMOOTH) / (card + SMOOTH)
    return ce + (1.0 - jnp.mean(dice))


if __name__ == "__main__":
    key = jax.random.PRNGKey(0)
    k_logits, k_labels = jax.random.split(key)

    B, C, H, W = 2, 4, 16, 16
    logits = jax.random.normal(k_logits, (B, C, H, W), jnp.float32)
    labels = jax.random.randint(k_labels, (B, H, W), 0, C, dtype=jnp.int32)

    out = jax.block_until_ready(combined_loss(logits, labels))
    ref = jax.block_until_ready(reference(logits, labels))

    if not jnp.allclose(out, ref, atol=1e-4, rtol=1e-4):
        raise AssertionError(f"mismatch: kernel={float(out)} ref={float(ref)}")

    print("KERNEL_OK")
</pallas_src>

<mosaic_0001>
module attributes {stable_mosaic.version = 11 : i64} {
  func.func @_combined_loss_kernel(%arg0: i32, %arg1: memref<4x512xf32, #tpu.memory_space<vmem>>, %arg2: memref<1x512xi32, #tpu.memory_space<vmem>>, %arg3: memref<1x1xf32, #tpu.memory_space<vmem>>, %arg4: memref<1x1xf32, #tpu.memory_space<vmem>>, %arg5: memref<4x1xf32, #tpu.memory_space<vmem>>, %arg6: memref<4x1xf32, #tpu.memory_space<vmem>>, %arg7: memref<4x1xf32, #tpu.memory_space<vmem>>) attributes {dimension_semantics = [#tpu.dimension_semantics<arbitrary>], iteration_bounds = array<i64: 1>, scalar_prefetch = 0 : i64, scratch_operands = 4 : i64, tpu.core_type = #tpu.core_type<tc>, window_params = [{transform_indices = @transform_0, window_bounds = array<i64: 4, 512>}, {transform_indices = @transform_1, window_bounds = array<i64: 1, 512>}, {pipeline_mode = #tpu.pipeline_mode<synchronous>, transform_indices = @transform_2, window_bounds = array<i64: 1, 1>}]} {
    %c0_i32 = arith.constant 0 : i32
    %0 = arith.cmpi eq, %arg0, %c0_i32 : i32
    %1 = arith.extui %0 : i1 to i32
    %c0_i32_0 = arith.constant 0 : i32
    %2 = arith.cmpi ne, %1, %c0_i32_0 : i32
    scf.if %2 {
      %cst_28 = arith.constant 0.000000e+00 : f32
      %50 = vector.broadcast %cst_28 : f32 to vector<1x1xf32>
      %c0_29 = arith.constant 0 : index
      %c0_30 = arith.constant 0 : index
      %51 = vector.load %arg4[%c0_29, %c0_30] : memref<1x1xf32, #tpu.memory_space<vmem>>, vector<1x1xf32>
      tpu.vector_store %arg4[%c0_29, %c0_30], %50 {strides = array<i32>} : memref<1x1xf32, #tpu.memory_space<vmem>>, vector<1x1xf32>,
      %cst_31 = arith.constant 0.000000e+00 : f32
      %52 = vector.broadcast %cst_31 : f32 to vector<4x1xf32>
      %c0_32 = arith.constant 0 : index
      %c0_33 = arith.constant 0 : index
      %53 = vector.load %arg5[%c0_32, %c0_33] : memref<4x1xf32, #tpu.memory_space<vmem>>, vector<4x1xf32>
      tpu.vector_store %arg5[%c0_32, %c0_33], %52 {strides = array<i32>} : memref<4x1xf32, #tpu.memory_space<vmem>>, vector<4x1xf32>,
      %cst_34 = arith.constant 0.000000e+00 : f32
      %54 = vector.broadcast %cst_34 : f32 to vector<4x1xf32>
      %c0_35 = arith.constant 0 : index
      %c0_36 = arith.constant 0 : index
      %55 = vector.load %arg6[%c0_35, %c0_36] : memref<4x1xf32, #tpu.memory_space<vmem>>, vector<4x1xf32>
      tpu.vector_store %arg6[%c0_35, %c0_36], %54 {strides = array<i32>} : memref<4x1xf32, #tpu.memory_space<vmem>>, vector<4x1xf32>,
      %cst_37 = arith.constant 0.000000e+00 : f32
      %56 = vector.broadcast %cst_37 : f32 to vector<4x1xf32>
      %c0_38 = arith.constant 0 : index
      %c0_39 = arith.constant 0 : index
      %57 = vector.load %arg7[%c0_38, %c0_39] : memref<4x1xf32, #tpu.memory_space<vmem>>, vector<4x1xf32>
      tpu.vector_store %arg7[%c0_38, %c0_39], %56 {strides = array<i32>} : memref<4x1xf32, #tpu.memory_space<vmem>>, vector<4x1xf32>,
    } else {
    }
    %c0 = arith.constant 0 : index
    %c0_1 = arith.constant 0 : index
    %3 = vector.load %arg1[%c0, %c0_1] : memref<4x512xf32, #tpu.memory_space<vmem>>, vector<4x512xf32>
    %c0_2 = arith.constant 0 : index
    %c0_3 = arith.constant 0 : index
    %4 = vector.load %arg2[%c0_2, %c0_3] : memref<1x512xi32, #tpu.memory_space<vmem>>, vector<1x512xi32>
    %5 = tpu.iota {dimensions = array<i32: 0>} : vector<4x512xi32>
    %6 = vector.broadcast %4 : vector<1x512xi32> to vector<4x512xi32>
    %7 = arith.cmpi eq, %5, %6 : vector<4x512xi32>
    %8 = arith.extui %7 : vector<4x512xi1> to vector<4x512xi32>
    %9 = arith.sitofp %8 : vector<4x512xi32> to vector<4x512xf32>
    %cst = arith.constant dense<0xFF800000> : vector<512xf32>
    %10 = vector.multi_reduction <maximumf>, %3, %cst [0] : vector<4x512xf32> to vector<512xf32>
    %11 = vector.shape_cast %10 : vector<512xf32> to vector<1x512xf32>
    %12 = vector.broadcast %11 : vector<1x512xf32> to vector<4x512xf32>
    %13 = arith.subf %3, %12 : vector<4x512xf32>
    %14 = math.exp %13 : vector<4x512xf32>
    %cst_4 = arith.constant dense<0.000000e+00> : vector<512xf32>
    %15 = vector.multi_reduction <add>, %14, %cst_4 [0] : vector<4x512xf32> to vector<512xf32>
    %16 = vector.shape_cast %15 : vector<512xf32> to vector<1x512xf32>
    %17 = tpu.reciprocal %16 : vector<1x512xf32> -> vector<1x512xf32>
    %18 = vector.broadcast %17 : vector<1x512xf32> to vector<4x512xf32>
    %19 = arith.mulf %14, %18 : vector<4x512xf32>
    %20 = arith.mulf %9, %3 : vector<4x512xf32>
    %cst_5 = arith.constant dense<0.000000e+00> : vector<512xf32>
    %21 = vector.multi_reduction <add>, %20, %cst_5 [0] : vector<4x512xf32> to vector<512xf32>
    %22 = vector.shape_cast %21 : vector<512xf32> to vector<1x512xf32>
    %23 = math.log %16 : vector<1x512xf32>
    %24 = arith.addf %23, %11 : vector<1x512xf32>
    %25 = arith.subf %24, %22 : vector<1x512xf32>
    %c0_6 = arith.constant 0 : index
    %c0_7 = arith.constant 0 : index
    %26 = vector.load %arg4[%c0_6, %c0_7] : memref<1x1xf32, #tpu.memory_space<vmem>>, vector<1x1xf32>
    %cst_8 = arith.constant dense<0.000000e+00> : vector<1xf32>
    %27 = vector.multi_reduction <add>, %25, %cst_8 [1] : vector<1x512xf32> to vector<1xf32>
    %28 = vector.shape_cast %27 : vector<1xf32> to vector<1x1xf32>
    %29 = arith.addf %26, %28 : vector<1x1xf32>
    %c0_9 = arith.constant 0 : index
    %c0_10 = arith.constant 0 : index
    %30 = vector.load %arg4[%c0_9, %c0_10] : memref<1x1xf32, #tpu.memory_space<vmem>>, vector<1x1xf32>
    tpu.vector_store %arg4[%c0_9, %c0_10], %29 {strides = array<i32>} : memref<1x1xf32, #tpu.memory_space<vmem>>, vector<1x1xf32>,
    %c0_11 = arith.constant 0 : index
    %c0_12 = arith.constant 0 : index
    %31 = vector.load %arg5[%c0_11, %c0_12] : memref<4x1xf32, #tpu.memory_space<vmem>>, vector<4x1xf32>
    %32 = arith.mulf %19, %9 : vector<4x512xf32>
    %cst_13 = arith.constant dense<0.000000e+00> : vector<4xf32>
    %33 = vector.multi_reduction <add>, %32, %cst_13 [1] : vector<4x512xf32> to vector<4xf32>
    %34 = vector.shape_cast %33 : vector<4xf32> to vector<4x1xf32>
    %35 = arith.addf %31, %34 : vector<4x1xf32>
    %c0_14 = arith.constant 0 : index
    %c0_15 = arith.constant 0 : index
    %36 = vector.load %arg5[%c0_14, %c0_15] : memref<4x1xf32, #tpu.memory_space<vmem>>, vector<4x1xf32>
    tpu.vector_store %arg5[%c0_14, %c0_15], %35 {strides = array<i32>} : memref<4x1xf32, #tpu.memory_space<vmem>>, vector<4x1xf32>,
    %c0_16 = arith.constant 0 : index
    %c0_17 = arith.constant 0 : index
    %37 = vector.load %arg6[%c0_16, %c0_17] : memref<4x1xf32, #tpu.memory_space<vmem>>, vector<4x1xf32>
    %cst_18 = arith.constant dense<0.000000e+00> : vector<4xf32>
    %38 = vector.multi_reduction <add>, %19, %cst_18 [1] : vector<4x512xf32> to vector<4xf32>
    %39 = vector.shape_cast %38 : vector<4xf32> to vector<4x1xf32>
    %40 = arith.addf %37, %39 : vector<4x1xf32>
    %c0_19 = arith.constant 0 : index
    %c0_20 = arith.constant 0 : index
    %41 = vector.load %arg6[%c0_19, %c0_20] : memref<4x1xf32, #tpu.memory_space<vmem>>, vector<4x1xf32>
    tpu.vector_store %arg6[%c0_19, %c0_20], %40 {strides = array<i32>} : memref<4x1xf32, #tpu.memory_space<vmem>>, vector<4x1xf32>,
    %c0_21 = arith.constant 0 : index
    %c0_22 = arith.constant 0 : index
    %42 = vector.load %arg7[%c0_21, %c0_22] : memref<4x1xf32, #tpu.memory_space<vmem>>, vector<4x1xf32>
    %cst_23 = arith.constant dense<0.000000e+00> : vector<4xf32>
    %43 = vector.multi_reduction <add>, %9, %cst_23 [1] : vector<4x512xf32> to vector<4xf32>
    %44 = vector.shape_cast %43 : vector<4xf32> to vector<4x1xf32>
    %45 = arith.addf %42, %44 : vector<4x1xf32>
    %c0_24 = arith.constant 0 : index
    %c0_25 = arith.constant 0 : index
    %46 = vector.load %arg7[%c0_24, %c0_25] : memref<4x1xf32, #tpu.memory_space<vmem>>, vector<4x1xf32>
    tpu.vector_store %arg7[%c0_24, %c0_25], %45 {strides = array<i32>} : memref<4x1xf32, #tpu.memory_space<vmem>>, vector<4x1xf32>,
    %c0_i32_26 = arith.constant 0 : i32
    %47 = arith.cmpi eq, %arg0, %c0_i32_26 : i32
    %48 = arith.extui %47 : i1 to i32
    %c0_i32_27 = arith.constant 0 : i32
    %49 = arith.cmpi ne, %48, %c0_i32_27 : i32
    scf.if %49 {
      %c0_28 = arith.constant 0 : index
      %c0_29 = arith.constant 0 : index
      %50 = vector.load %arg4[%c0_28, %c0_29] : memref<1x1xf32, #tpu.memory_space<vmem>>, vector<1x1xf32>
      %cst_30 = arith.constant 0.001953125 : f32
      %51 = vector.broadcast %cst_30 : f32 to vector<1x1xf32>
      %52 = arith.mulf %50, %51 : vector<1x1xf32>
      %c0_31 = arith.constant 0 : index
      %c0_32 = arith.constant 0 : index
      %53 = vector.load %arg5[%c0_31, %c0_32] : memref<4x1xf32, #tpu.memory_space<vmem>>, vector<4x1xf32>
      %c0_33 = arith.constant 0 : index
      %c0_34 = arith.constant 0 : index
      %54 = vector.load %arg6[%c0_33, %c0_34] : memref<4x1xf32, #tpu.memory_space<vmem>>, vector<4x1xf32>
      %c0_35 = arith.constant 0 : index
      %c0_36 = arith.constant 0 : index
      %55 = vector.load %arg7[%c0_35, %c0_36] : memref<4x1xf32, #tpu.memory_space<vmem>>, vector<4x1xf32>
      %56 = arith.addf %54, %55 : vector<4x1xf32>
      %cst_37 = arith.constant 2.000000e+00 : f32
      %57 = vector.broadcast %cst_37 : f32 to vector<4x1xf32>
      %58 = arith.mulf %57, %53 : vector<4x1xf32>
      %cst_38 = arith.constant 9.99999997E-7 : f32
      %59 = vector.broadcast %cst_38 : f32 to vector<4x1xf32>
      %60 = arith.addf %58, %59 : vector<4x1xf32>
      %cst_39 = arith.constant 9.99999997E-7 : f32
      %61 = vector.broadcast %cst_39 : f32 to vector<4x1xf32>
      %62 = arith.addf %56, %61 : vector<4x1xf32>
      %63 = arith.divf %60, %62 : vector<4x1xf32>
      %cst_40 = arith.constant dense<0.000000e+00> : vector<1xf32>
      %64 = vector.multi_reduction <add>, %63, %cst_40 [0] : vector<4x1xf32> to vector<1xf32>
      %65 = vector.shape_cast %64 : vector<1xf32> to vector<1x1xf32>
      %cst_41 = arith.constant 2.500000e-01 : f32
      %66 = vector.broadcast %cst_41 : f32 to vector<1x1xf32>
      %67 = arith.mulf %65, %66 : vector<1x1xf32>
      %cst_42 = arith.constant 1.000000e+00 : f32
      %68 = vector.broadcast %cst_42 : f32 to vector<1x1xf32>
      %69 = arith.subf %68, %67 : vector<1x1xf32>
      %70 = arith.addf %52, %69 : vector<1x1xf32>
      %c0_43 = arith.constant 0 : index
      %c0_44 = arith.constant 0 : index
      %71 = vector.load %arg3[%c0_43, %c0_44] : memref<1x1xf32, #tpu.memory_space<vmem>>, vector<1x1xf32>
      tpu.vector_store %arg3[%c0_43, %c0_44], %70 {strides = array<i32>} : memref<1x1xf32, #tpu.memory_space<vmem>>, vector<1x1xf32>,
    } else {
    }
    return
  }
  func.func @transform_0(%arg0: i32) -> (i32, i32) {
    %c0_i32 = arith.constant 0 : i32
    %c0_i32_0 = arith.constant 0 : i32
    return %c0_i32, %arg0 : i32, i32
  }
  func.func @transform_1(%arg0: i32) -> (i32, i32) {
    %c0_i32 = arith.constant 0 : i32
    %c0_i32_0 = arith.constant 0 : i32
    return %c0_i32, %arg0 : i32, i32
  }
  func.func @transform_2(%arg0: i32) -> (i32, i32) {
    %c0_i32 = arith.constant 0 : i32
    %c0_i32_0 = arith.constant 0 : i32
    %c0_i32_1 = arith.constant 0 : i32
    return %c0_i32, %c0_i32_0 : i32, i32
  }
}

</mosaic_0001>

<bundles_post_ra>
// kernel: combined_loss.1
= control target key start
LH: loop header
LB: loop body
LE: loop exit
PB: predicated region body
PF: predicated region fallthrough
CT: control target
= control target key end

     0   :  { %s652_s0 = inlined_call_operand.vmem [shape: f32[4,512], index: 0, kind: input, shape index: {}]   ;;  %s653_s1 = inlined_call_operand.vmem [shape: s32[1,512], index: 1, kind: input, shape index: {}]   ;;  %s654_s2 = inlined_call_operand.hbm [shape: f32[1,1], index: 2, kind: output, shape index: {}]  }
   0x1   :  { %v22_v0 = vld [vmem:[%s652_s0] sm:$0xff]  ;;  %v484_v1 = vld [vmem:[%s652_s0 + $0x8] sm:$0xff] }
   0x2   :  { %45 = vst [vmem:[#allocation1] ss:$2 sm:$0xff] %v22_v0 }
   0x3   :  { %47 = vst [vmem:[#allocation1 + $0x10] ss:$2 sm:$0xff] %v484_v1 }
   0x4   :  { %7 = vsyncpa [#allocation7], 0  ;;  %vm56_vm0 = vcmask 1043456   ;;  %s398_s17 = sshll.u32 %s654_s2, 4  ;;  %s399_s17 = int_to_ptr.hbm [resolvable:$true] %s398_s17 }
   0x9   :  { %v48_v2 = vld.sshfl [vmem:[#allocation1] sm:$0xff pattern:$0x75316420]  ;;  %v49_v3 = vld.sshfl [vmem:[#allocation1 + $0x8] sm:$0xff pattern:$0x75316420] }
   0xa   :  { %v50_v4 = vld.sshfl [vmem:[#allocation1 + $0x10] sm:$0xff pattern:$0x75316420]  ;;  %v51_v5 = vld.sshfl [vmem:[#allocation1 + $0x18] sm:$0xff pattern:$0x75316420] }
   0xb   :  { %v57_v6 = vsel %vm56_vm0, %v48_v2, -inf  ;;  %v64_v7 = vsel %vm56_vm0, %v49_v3, -inf  ;;  %v71_v8 = vsel %vm56_vm0, %v50_v4, -inf  ;;  %v78_v9 = vsel %vm56_vm0, %v51_v5, -inf }
   0xc   :  { %v58_v10 = vrot.slane %v57_v6, 4  ;;  %v65_v11 = vrot.slane %v64_v7, 4  ;;  %v72_v12 = vrot.slane %v71_v8, 4  ;;  %v79_v13 = vrot.slane %v78_v9, 4 }
   0xe   :  { %v59_v14 = vmax.f32 %v57_v6, %v58_v10  ;;  %v66_v15 = vmax.f32 %v64_v7, %v65_v11  ;;  %v73_v16 = vmax.f32 %v71_v8, %v72_v12  ;;  %v80_v17 = vmax.f32 %v78_v9, %v79_v13 }
   0xf   :  { %v25_v6 = vlaneseq }
  0x10   :  { %v60_v18 = vrot.slane %v59_v14, 2  ;;  %v67_v19 = vrot.slane %v66_v15, 2  ;;  %v74_v20 = vrot.slane %v73_v16, 2  ;;  %v81_v21 = vrot.slane %v80_v17, 2 }
  0x11   :  { %v26_v13 = vshrl.u32 %v25_v6, 7 }
  0x12   :  { %v61_v22 = vmax.f32 %v59_v14, %v60_v18  ;;  %v68_v23 = vmax.f32 %v66_v15, %v67_v19  ;;  %v75_v24 = vmax.f32 %v73_v16, %v74_v20  ;;  %v82_v25 = vmax.f32 %v80_v17, %v81_v21 }
  0x14   :  { %v62_v26 = vrot.slane %v61_v22, 1  ;;  %v69_v27 = vrot.slane %v68_v23, 1  ;;  %v76_v28 = vrot.slane %v75_v24, 1  ;;  %v83_v29 = vrot.slane %v82_v25, 1 }
  0x16   :  { %v491_v30 = vmax.f32 %v61_v22, %v62_v26  ;;  %v493_v31 = vmax.f32 %v68_v23, %v69_v27  ;;  %v495_v32 = vmax.f32 %v75_v24, %v76_v28  ;;  %v497_v33 = vmax.f32 %v82_v25, %v83_v29 }
  0x17   :  { %v461_v22 = vmov 0.0  }
  0x18   :  { %v89_v34 = vrot.slane %v493_v31, 4  ;;  %v90_v35 = vrot.slane %v497_v33, 4 }
  0x1a   :  { %v91_v36 = vsel %vm56_vm0, %v491_v30, %v89_v34  ;;  %v92_v37 = vsel %vm56_vm0, %v495_v32, %v90_v35 }
  0x1b   :  { %v95_v38 = vsub.f32 %v22_v0, %v91_v36  ;;  %v96_v39 = vsub.f32 %v484_v1, %v92_v37 }
  0x1d   :  { %v97_v40 = vmul.f32 1.442695, %v95_v38  ;;  %v99_v41 = vmul.f32 1.442695, %v96_v39 }
  0x1f   :  { %413 = vpow2.f32 %v97_v40 }
  0x20   :  { %415 = vpow2.f32 %v99_v41 }
  0x25   :  { %v506_v42 = vpop.eup %413 }
  0x26   :  { %v508_v43 = vpop.eup %415  ;;  %103 = vst [vmem:[#allocation1] ss:$2 sm:$0xff] %v506_v42 }
  0x27   :  { %105 = vst [vmem:[#allocation1 + $0x10] ss:$2 sm:$0xff] %v508_v43 }
  0x2d   :  { %v106_v44 = vld.sshfl [vmem:[#allocation1] sm:$0xff pattern:$0x75316420]  ;;  %v107_v45 = vld.sshfl [vmem:[#allocation1 + $0x8] sm:$0xff pattern:$0x75316420] }
  0x2e   :  { %v108_v46 = vld.sshfl [vmem:[#allocation1 + $0x10] sm:$0xff pattern:$0x75316420]  ;;  %v109_v47 = vld.sshfl [vmem:[#allocation1 + $0x18] sm:$0xff pattern:$0x75316420] }
  0x2f   :  { %v114_v48 = vsel %vm56_vm0, %v106_v44, 0.0  ;;  %v121_v49 = vsel %vm56_vm0, %v107_v45, 0.0  ;;  %v128_v50 = vsel %vm56_vm0, %v108_v46, 0.0  ;;  %v135_v51 = vsel %vm56_vm0, %v109_v47, 0.0  ;;  %210 = vst [vmem:[#allocation1] ss:$2 sm:$0xff] %v22_v0 }
  0x30   :  { %v115_v52 = vrot.slane %v114_v48, 4  ;;  %v122_v53 = vrot.slane %v121_v49, 4  ;;  %v129_v54 = vrot.slane %v128_v50, 4  ;;  %v136_v55 = vrot.slane %v135_v51, 4  ;;  %212 = vst [vmem:[#allocation1 + $0x10] ss:$2 sm:$0xff] %v484_v1 }
  0x31   :  { %v24_v0 = vld [vmem:[%s653_s1] sm:$0xf]  ;;  %s462_s1 = smov [#allocation6]  }
  0x32   :  { %v116_v56 = vadd.f32 %v115_v52, %v114_v48  ;;  %v123_v57 = vadd.f32 %v122_v53, %v121_v49  ;;  %v130_v58 = vadd.f32 %v129_v54, %v128_v50  ;;  %v137_v59 = vadd.f32 %v136_v55, %v135_v51  ;;  %s396_s14 = sshll.u32 %s462_s1, 4  ;;  %s397_s14 = int_to_ptr.vmem [resolvable:$true] %s396_s14 }
  0x33   :  { %v27_v14 = vperm.slane %v24_v0, 0  ;;  %v28_v15 = vperm.slane %v24_v0, 1  ;;  %v30_v16 = vperm.slane %v24_v0, 3  ;;  %v29_v18 = vperm.slane %v24_v0, 2 }
  0x34   :  { %v117_v60 = vrot.slane %v116_v56, 2  ;;  %v124_v61 = vrot.slane %v123_v57, 2  ;;  %v131_v62 = vrot.slane %v130_v58, 2  ;;  %v138_v63 = vrot.slane %v137_v59, 2 }
  0x35   :  { %vm31_vm1 = vcmp.eq.s32.totalorder %v26_v13, %v27_v14  ;;  %vm32_vm2 = vcmp.eq.s32.totalorder %v26_v13, %v28_v15  ;;  %vm34_vm3 = vcmp.eq.s32.totalorder %v26_v13, %v30_v16  ;;  %vm547_vm6 = vcmp.eq.s32.totalorder %v26_v13, %v29_v18 }
  0x36   :  { %v118_v2 = vadd.f32 %v117_v60, %v116_v56  ;;  %v125_v3 = vadd.f32 %v124_v61, %v123_v57  ;;  %v132_v4 = vadd.f32 %v131_v62, %v130_v58  ;;  %v139_v5 = vadd.f32 %v138_v63, %v137_v59 }
  0x37   :  { %v535_v23 = vsel %vm31_vm1, 1.0, %v461_v22  ;;  %v538_v24 = vsel %vm32_vm2, 1.0, %v461_v22  ;;  %v541_v25 = vsel %vm34_vm3, 1.0, %v461_v22 }
  0x38   :  { %v119_v7 = vrot.slane %v118_v2, 1  ;;  %v126_v8 = vrot.slane %v125_v3, 1  ;;  %v133_v1 = vrot.slane %v132_v4, 1  ;;  %v140_v9 = vrot.slane %v139_v5, 1 }
  0x39   :  { %v283_v60 = vrot.slane %v538_v24, 4  ;;  %v284_v13 = vrot.slane %v541_v25, 4 }
  0x3a   :  { %v520_v10 = vadd.f32 %v119_v7, %v118_v2  ;;  %v522_v11 = vadd.f32 %v126_v8, %v125_v3  ;;  %v524_v12 = vadd.f32 %v133_v1, %v132_v4  ;;  %v526_v17 = vadd.f32 %v140_v9, %v139_v5 }
  0x3b   :  { %v592_v1 = vsel %vm547_vm6, 1.0, %v461_v22  ;;  %v285_v18 = vsel %vm56_vm0, %v535_v23, %v283_v60  ;;  %vm18_vm6 = vcmask 3072  }
  0x3c   :  { %417 = vrcp.f32 %v520_v10  ;;  %v153_v19 = vand.u32 2147483648, %v520_v10  ;;  %v167_v20 = vand.u32 2147483648, %v522_v11  ;;  %vm147_vm4 = vweird.f32 %v520_v10  ;;  %20 = vst.msk [vmem:[#allocation4] sm:$0xf] %vm18_vm6, %v461_v22 }
  0x3d   :  { %419 = vrcp.f32 %v522_v11  ;;  %v151_v28 = vand.u32 2147483647, %v520_v10  ;;  %vm161_vm5 = vweird.f32 %v522_v11  ;;  %v165_v37 = vand.u32 2147483647, %v522_v11  ;;  %19 = vst.msk [vmem:[#allocation3] sm:$0xf] %vm18_vm6, %v461_v22 }
  0x3e   :  { %421 = vrcp.f32 %v524_v12  ;;  %v154_v35 = vor.u32 1.1754944e-38, %v153_v19  ;;  %vm175_vm7 = vweird.f32 %v524_v12  ;;  %v168_v39 = vor.u32 1.1754944e-38, %v167_v20  ;;  %21 = vst.msk [vmem:[#allocation5] sm:$0xf] %vm18_vm6, %v461_v22 }
  0x3f   :  { %423 = vrcp.f32 %v526_v17  ;;  %v179_v45 = vand.u32 2147483647, %v524_v12  ;;  %v181_v46 = vand.u32 2147483648, %v524_v12  ;;  %vm189_vm12 = vweird.f32 %v526_v17 }
  0x40   :  { %v193_v52 = vand.u32 2147483647, %v526_v17  ;;  %v195_v53 = vand.u32 2147483648, %v526_v17  ;;  %vm152_vm15 = vcmp.eq.f32.partialorder %v151_v28, 8.507059e+37  ;;  %vm166_vm1 = vcmp.eq.f32.partialorder %v165_v37, 8.507059e+37 }
  0x41   :  { %vm180_vm3 = vcmp.eq.f32.partialorder %v179_v45, 8.507059e+37  ;;  %v182_v3 = vor.u32 1.1754944e-38, %v181_v46  ;;  %v286_v28 = vsel %vm56_vm0, %v592_v1, %v284_v13  ;;  %425 = vlog2.f32 %v520_v10 }
  0x42   :  { %v418_v21 = vpop.eup %417  ;;  %v196_v4 = vor.u32 1.1754944e-38, %v195_v53  ;;  %427 = vlog2.f32 %v522_v11  ;;  %v342_v53 = vsel %vm56_vm0, %v535_v23, 0.0 }
  0x43   :  { %v420_v26 = vpop.eup %419  ;;  %v143_v27 = vmul.f32 %v418_v21, %v520_v10  ;;  %vm148_vm8 = vweird.f32 %v418_v21  ;;  %429 = vlog2.f32 %v524_v12 }
  0x44   :  { %v422_v29 = vpop.eup %421  ;;  %v157_v36 = vmul.f32 %v420_v26, %v522_v11  ;;  %vm162_vm9 = vweird.f32 %v420_v26  ;;  %vm560_vm11 = vmor %vm147_vm4, %vm148_vm8  ;;  %431 = vlog2.f32 %v526_v17 }
  0x45   :  { %v144_v38 = vsub.f32 1.0, %v143_v27  ;;  %v171_v40 = vmul.f32 %v422_v29, %v524_v12  ;;  %v424_v41 = vpop.eup %423  ;;  %vm176_vm10 = vweird.f32 %v422_v29  ;;  %vm569_vm13 = vmor %vm161_vm5, %vm162_vm9  ;;  %vm194_vm5 = vcmp.eq.f32.partialorder %v193_v52, 8.507059e+37 }
  0x46   :  { %v158_v44 = vsub.f32 1.0, %v157_v36  ;;  %v185_v49 = vmul.f32 %v424_v41, %v526_v17  ;;  %vm190_vm14 = vweird.f32 %v424_v41  ;;  %vm576_vm2 = vmor %vm175_vm7, %vm176_vm10  ;;  %v216_v36 = vld.sshfl [vmem:[#allocation1 + $0x18] sm:$0xff pattern:$0x75316420]  ;;  %vm16_vm7 = vcmask 0  }
  0x47   :  { %v145_v47 = vmul.f32 %v418_v21, %v144_v38  ;;  %v172_v48 = vsub.f32 1.0, %v171_v40  ;;  %vm191_vm4 = vmor %vm189_vm12, %vm190_vm14  ;;  %17 = vst.msk [vmem:[#allocation2] sm:$0x1] %vm16_vm7, %v461_v22 }
  0x48   :  { %v159_v51 = vmul.f32 %v420_v26, %v158_v44  ;;  %v186_v57 = vsub.f32 1.0, %v185_v49 }
  0x49   :  { %v146_v54 = vadd.f32 %v418_v21, %v145_v47  ;;  %v173_v56 = vmul.f32 %v422_v29, %v172_v48 }
  0x4a   :  { %v160_v58 = vadd.f32 %v420_v26, %v159_v51  ;;  %v187_v63 = vmul.f32 %v424_v41, %v186_v57 }
  0x4b   :  { %v150_v61 = vsel %vm560_vm11, %v418_v21, %v146_v54  ;;  %v174_v62 = vadd.f32 %v422_v29, %v173_v56  ;;  %v213_v21 = vld.sshfl [vmem:[#allocation1] sm:$0xff pattern:$0x75316420]  ;;  %v426_v54 = vpop.eup %425 }
  0x4c   :  { %v164_v2 = vsel %vm569_vm13, %v420_v26, %v160_v58  ;;  %v155_v5 = vsel %vm152_vm15, %v154_v35, %v150_v61  ;;  %v188_v7 = vadd.f32 %v424_v41, %v187_v63  ;;  %v214_v26 = vld.sshfl [vmem:[#allocation1 + $0x8] sm:$0xff pattern:$0x75316420]  ;;  %v215_v35 = vld.sshfl [vmem:[#allocation1 + $0x10] sm:$0xff pattern:$0x75316420]  ;;  %v221_v37 = vmul.f32 %v535_v23, %v213_v21 }
  0x4d   :  { %v169_v6 = vsel %vm166_vm1, %v168_v39, %v164_v2  ;;  %v178_v0 = vsel %vm576_vm2, %v422_v29, %v174_v62  ;;  %v222_v38 = vmul.f32 %v538_v24, %v214_v26  ;;  %v223_v39 = vmul.f32 %v592_v1, %v215_v35  ;;  %v428_v2 = vpop.eup %427 }
  0x4e   :  { %v202_v8 = vrot.slane %v169_v6, 4  ;;  %v192_v9 = vsel %vm191_vm4, %v424_v41, %v188_v7  ;;  %v183_v14 = vsel %vm180_vm3, %v182_v3, %v178_v0  ;;  %v225_v41 = vsel %vm56_vm0, %v221_v37, 0.0  ;;  %v430_v7 = vpop.eup %429 }
  0x4f   :  { %v197_v15 = vsel %vm194_vm5, %v196_v4, %v192_v9  ;;  %v232_v44 = vsel %vm56_vm0, %v222_v38, 0.0  ;;  %v226_v46 = vrot.slane %v225_v41, 4  ;;  %v254_v63 = vmul.f32 0.6931472, %v426_v54 }
  0x50   :  { %v204_v16 = vsel %vm56_vm0, %v155_v5, %v202_v8  ;;  %v203_v19 = vrot.slane %v197_v15, 4  ;;  %v233_v47 = vrot.slane %v232_v44, 4  ;;  %v432_v15 = vpop.eup %431 }
  0x51   :  { %v208_v20 = vmul.f32 %v506_v42, %v204_v16  ;;  %v224_v42 = vmul.f32 %v541_v25, %v216_v36  ;;  %v227_v10 = vadd.f32 %v226_v46, %v225_v41 }
  0x52   :  { %v205_v27 = vsel %vm56_vm0, %v183_v14, %v203_v19  ;;  %v234_v50 = vadd.f32 %v233_v47, %v232_v44  ;;  %v256_v14 = vmul.f32 0.6931472, %v428_v2  ;;  %v258_v19 = vmul.f32 0.6931472, %v430_v7 }
  0x53   :  { %v289_v29 = vmul.f32 %v285_v18, %v208_v20  ;;  %v209_v34 = vmul.f32 %v508_v43, %v205_v27  ;;  %v239_v43 = vsel %vm56_vm0, %v223_v39, 0.0  ;;  %v246_v45 = vsel %vm56_vm0, %v224_v42, 0.0 }
  0x54   :  { %v240_v48 = vrot.slane %v239_v43, 4  ;;  %v247_v49 = vrot.slane %v246_v45, 4  ;;  %v228_v58 = vrot.slane %v227_v10, 2  ;;  %v235_v59 = vrot.slane %v234_v50, 2 }
  0x55   :  { %293 = vst [vmem:[#allocation1] ss:$2 sm:$0xff] %v289_v29  ;;  %v290_v40 = vmul.f32 %v286_v28, %v209_v34  ;;  %v260_v28 = vmul.f32 0.6931472, %v432_v15  ;;  %v262_v37 = vadd.f32 %v256_v14, %v493_v31  ;;  %v263_v38 = vadd.f32 %v258_v19, %v495_v32 }
  0x56   :  { %v241_v51 = vadd.f32 %v240_v48, %v239_v43  ;;  %v248_v52 = vadd.f32 %v247_v49, %v246_v45  ;;  %v229_v12 = vadd.f32 %v228_v58, %v227_v10  ;;  %v236_v4 = vadd.f32 %v235_v59, %v234_v50  ;;  %v269_v58 = vld [vmem:[#allocation2] sm:$0x1] }
  0x57   :  { %295 = vst [vmem:[#allocation1 + $0x10] ss:$2 sm:$0xff] %v290_v40  ;;  %v264_v40 = vadd.f32 %v260_v28, %v497_v33  ;;  %v343_v44 = vsel %vm56_vm0, %v538_v24, 0.0  ;;  %v345_v33 = vsel %vm56_vm0, %v592_v1, 0.0  ;;  %v316_v1 = vld [vmem:[#allocation4] sm:$0xf] }
  0x58   :  { %v242_v61 = vrot.slane %v241_v51, 2  ;;  %v249_v62 = vrot.slane %v248_v52, 2  ;;  %v230_v9 = vrot.slane %v229_v12, 1  ;;  %v237_v13 = vrot.slane %v236_v4, 1 }
  0x59   :  { %v344_v50 = vadd.f32 %v343_v44, %v342_v53 }
  0x5a   :  { %v243_v6 = vadd.f32 %v242_v61, %v241_v51  ;;  %v250_v0 = vadd.f32 %v249_v62, %v248_v52  ;;  %v231_v26 = vadd.f32 %v230_v9, %v229_v12  ;;  %v238_v27 = vadd.f32 %v237_v13, %v236_v4 }
  0x5b   :  { %v346_v24 = vadd.f32 %v345_v33, %v344_v50 }
  0x5c   :  { %v296_v55 = vld.sshfl [vmem:[#allocation1] sm:$0xff pattern:$0x75316420]  ;;  %v297_v56 = vld.sshfl [vmem:[#allocation1 + $0x8] sm:$0xff pattern:$0x75316420]  ;;  %v266_v43 = vsub.f32 %v262_v37, %v238_v27 }
  0x5d   :  { %319 = vst [vmem:[#allocation1] ss:$2 sm:$0xff] %v208_v20  ;;  %v304_v11 = vsel %vm56_vm0, %v296_v55, 0.0  ;;  %v305_v57 = vsel %vm56_vm0, %v297_v56, 0.0  ;;  %v244_v16 = vrot.slane %v243_v6, 1  ;;  %v251_v18 = vrot.slane %v250_v0, 1 }
  0x5e   :  { %v306_v60 = vadd.f32 %v305_v57, %v304_v11  ;;  %v298_v23 = vld.sshfl [vmem:[#allocation1 + $0x10] sm:$0xff pattern:$0x75316420]  ;;  %v299_v3 = vld.sshfl [vmem:[#allocation1 + $0x18] sm:$0xff pattern:$0x75316420]  ;;  %v261_v20 = vadd.f32 %v254_v63, %v491_v30 }
  0x5f   :  { %321 = vst [vmem:[#allocation1 + $0x10] ss:$2 sm:$0xff] %v209_v34  ;;  %v307_v5 = vsel %vm56_vm0, %v298_v23, 0.0  ;;  %v309_v17 = vsel %vm56_vm0, %v299_v3, 0.0  ;;  %v245_v35 = vadd.f32 %v244_v16, %v243_v6  ;;  %v252_v36 = vadd.f32 %v251_v18, %v250_v0  ;;  %v278_v11 = vld [vmem:[#allocation3] sm:$0xf] }
  0x60   :  { %v308_v8 = vadd.f32 %v307_v5, %v306_v60  ;;  %v265_v30 = vsub.f32 %v261_v20, %v231_v26  ;;  %v347_v55 = vsel %vm56_vm0, %v541_v25, 0.0  ;;  %v341_v25 = vld [vmem:[#allocation5] sm:$0xf] }
  0x61   :  { %v267_v45 = vsub.f32 %v263_v38, %v245_v35  ;;  %v268_v48 = vsub.f32 %v264_v40, %v252_v36  ;;  %v348_v56 = vadd.f32 %v347_v55, %v346_v24 }
  0x62   :  { %v310_v21 = vadd.f32 %v309_v17, %v308_v8  ;;  %v270_v49 = vadd.f32 %v266_v43, %v265_v30 }
  0x64   :  { %v322_v29 = vld.sshfl [vmem:[#allocation1] sm:$0xff pattern:$0x75316420]  ;;  %v323_v34 = vld.sshfl [vmem:[#allocation1 + $0x8] sm:$0xff pattern:$0x75316420]  ;;  %311 = vadd.xlane.f32.xlu1 %v310_v21  ;;  %v271_v51 = vadd.f32 %v270_v49, %v267_v45 }
  0x65   :  { %v330_v39 = vsel %vm56_vm0, %v322_v29, 0.0  ;;  %v331_v42 = vsel %vm56_vm0, %v323_v34, 0.0 }
  0x66   :  { %v332_v41 = vadd.f32 %v331_v42, %v330_v39  ;;  %v324_v46 = vld.sshfl [vmem:[#allocation1 + $0x10] sm:$0xff pattern:$0x75316420]  ;;  %v325_v47 = vld.sshfl [vmem:[#allocation1 + $0x18] sm:$0xff pattern:$0x75316420]  ;;  %v272_v54 = vadd.f32 %v271_v51, %v268_v48 }
  0x67   :  { %v333_v31 = vsel %vm56_vm0, %v324_v46, 0.0  ;;  %v335_v32 = vsel %vm56_vm0, %v325_v47, 0.0 }
  0x68   :  { %v334_v10 = vadd.f32 %v333_v31, %v332_v41 }
  0x6a   :  { %v336_v52 = vadd.f32 %v335_v32, %v334_v10 }
  0x6c   :  { %337 = vadd.xlane.f32.xlu0 %v336_v52  ;;  %273 = vadd.xlane.f32.xlu1 %v272_v54 }
  0x74   :  { %349 = vadd.xlane.f32.xlu0 %v348_v56 }
  0xd7   :  { %v312_v53 = vpop.xlane.xlu1 %311 }
  0xd8   :  { %v313_v57 = vadd.f32 %v312_v53, %v278_v11 }
  0xda   :  { %315 = vst.msk [vmem:[#allocation3] sm:$0xf] %vm18_vm6, %v313_v57 }
  0xdf   :  { %v338_v59 = vpop.xlane.xlu0 %337  ;;  %v274_v61 = vpop.xlane.xlu1 %273 }
  0xe0   :  { %v339_v60 = vadd.f32 %v338_v59, %v316_v1  ;;  %v275_v62 = vadd.f32 %v274_v61, %v269_v58 }
  0xe1   :  { %v358_v5 = vld [vmem:[#allocation3] sm:$0xf] }
  0xe2   :  { %340 = vst.msk [vmem:[#allocation4] sm:$0xf] %vm18_vm6, %v339_v60  ;;  %v362_v6 = vmul.f32 2.0, %v358_v5 }
  0xe3   :  { %277 = vst.msk [vmem:[#allocation2] sm:$0x1] %vm16_vm7, %v275_v62 }
  0xe4   :  { %v363_v13 = vadd.f32 1e-06, %v362_v6 }
  0xe7   :  { %v350_v63 = vpop.xlane.xlu0 %349 }
  0xe8   :  { %v351_v2 = vadd.f32 %v350_v63, %v341_v25 }
  0xe9   :  { %v359_v22 = vld [vmem:[#allocation4] sm:$0xf] }
  0xea   :  { %352 = vst.msk [vmem:[#allocation5] sm:$0xf] %vm18_vm6, %v351_v2  ;;  %v356_v34 = vld [vmem:[#allocation2] sm:$0x1] }
  0xeb   :  { %v357_v36 = vmul.f32 0.001953125, %v356_v34 }
  0xf1   :  { %v360_v23 = vld [vmem:[#allocation5] sm:$0xf] }
  0xf2   :  { %v361_v3 = vadd.f32 %v360_v23, %v359_v22 }
  0xf4   :  { %v364_v12 = vadd.f32 1e-06, %v361_v3 }
  0xf6   :  { %433 = vrcp.f32 %v364_v12  ;;  %v376_v7 = vand.u32 2147483648, %v364_v12  ;;  %v374_v9 = vand.u32 2147483647, %v364_v12  ;;  %vm370_vm8 = vweird.f32 %v364_v12 }
  0xf8   :  { %v377_v15 = vor.u32 1.1754944e-38, %v376_v7  ;;  %vm375_vm10 = vcmp.eq.f32.partialorder %v374_v9, 8.507059e+37 }
  0xfc   :  { %v434_v4 = vpop.eup %433 }
  0xfd   :  { %v366_v17 = vmul.f32 %v434_v4, %v364_v12  ;;  %vm371_vm0 = vweird.f32 %v434_v4 }
  0xfe   :  { %vm372_vm9 = vmor %vm370_vm8, %vm371_vm0 }
  0xff   :  { %v367_v0 = vsub.f32 1.0, %v366_v17 }
 0x101   :  { %v368_v8 = vmul.f32 %v434_v4, %v367_v0 }
 0x103   :  { %v369_v14 = vadd.f32 %v434_v4, %v368_v8 }
 0x105   :  { %v373_v16 = vsel %vm372_vm9, %v434_v4, %v369_v14 }
 0x106   :  { %v378_v18 = vsel %vm375_vm10, %v377_v15, %v373_v16 }
 0x107   :  { %v379_v19 = vmul.f32 %v378_v18, %v363_v13 }
 0x109   :  { %v380_v20 = vsel %vm18_vm6, %v379_v19, 0.0 }
 0x10a   :  { %v381_v21 = vrot.slane %v380_v20, 4 }
 0x10c   :  { %v382_v26 = vadd.f32 %v381_v21, %v380_v20 }
 0x10e   :  { %v383_v27 = vrot.slane %v382_v26, 2 }
 0x110   :  { %v384_v28 = vadd.f32 %v383_v27, %v382_v26 }
 0x112   :  { %v385_v29 = vrot.slane %v384_v28, 1 }
 0x114   :  { %v386_v35 = vadd.f32 %v385_v29, %v384_v28 }
 0x116   :  { %v387_v37 = vmul.f32 0.25, %v386_v35 }
 0x118   :  { %v388_v38 = vsub.f32 1.0, %v387_v37 }
 0x11a   :  { %v389_v39 = vadd.f32 %v388_v38, %v357_v36 }
 0x11c   :  { %390 = vst.msk [vmem:[#allocation6] sm:$0x1] %vm16_vm7, %v389_v39 }
 0x11d   :  { %401 = dma.vmem_to_hbm [thread:$0]  %s397_s14, 16, %s399_s17, [#allocation7]  }
 0x11e   :  { %459 = dma.done.wait [#allocation7], 16  }
 0x11f   :  { %460 = vsyncadd [#allocation7], 4294967280 }
 0x120   :  { %406 = vsyncpa [#allocation7], 1 }

</bundles_post_ra>
